<compile_context>
chip_gen: v5e
topology: v5e:2x2
jax: 0.10.0
libtpu: 0.0.40
codegen_flags: <defaults>
</compile_context>

<pallas_src>
import functools

import jax
import jax.numpy as jnp
from jax.experimental import pallas as pl
from jax.experimental.pallas import tpu as pltpu


def _round_up(x: int, m: int) -> int:
    return (x + m - 1) // m * m


def _vmem_estimate_bytes(L: int, Lp: int, L_out: int, tc: int, itemsize: int) -> int:
    # double-buffered input block + double-buffered output block + padded scratch
    return (2 * L * tc + 2 * L_out * tc + _round_up(Lp, 8) * tc) * itemsize


def _choose_c_tile(c: int, L: int, Lp: int, L_out: int, itemsize: int,
                   budget_bytes: int = 12 << 20) -> int:
    """Largest 128-multiple divisor of c (<= 512 lanes preferred) within the VMEM budget."""
    if c % 128 != 0 or c == 128:
        return c                       # cannot tile lanes below 128 alignment
    m = c // 128
    tiles = sorted({128 * d for d in range(1, m + 1) if m % d == 0}, reverse=True)
    for tc in tiles:
        if tc <= 512 and _vmem_estimate_bytes(L, Lp, L_out, tc, itemsize) <= budget_bytes:
            return tc
    return tiles[-1]                   # == 128 (very long sequences)


def _choose_row_chunk(tc: int) -> int:
    # Keep the f32 accumulator around <= 16 vregs (16K f32 elements).
    max_elems = 16 * 1024
    return max(8, (max_elems // max(tc, 1)) // 8 * 8)


def _moving_avg_kernel(x_ref, o_ref, xp_ref, *, kernel_size: int, stride: int,
                       pad: int, L: int, L_out: int, row_chunk: int):
    # x_ref : (1, L, TC)      unpadded input block
    # o_ref : (1, L_out, TC)  pooled output block
    # xp_ref: (Lp, TC)        VMEM scratch holding the edge-replicated sequence
    tc = o_ref.shape[2]

    # --- Build the padded sequence in VMEM (replicate first/last timestep) ---
    if pad > 0:
        first = x_ref[0, 0:1, :]
        last = x_ref[0, L - 1:L, :]
        xp_ref[0:pad, :] = jnp.broadcast_to(first, (pad, tc))
        xp_ref[pad + L:pad + L + pad, :] = jnp.broadcast_to(last, (pad, tc))
    # Copy the body in bounded chunks to keep vreg live ranges small.
    for r0 in range(0, L, row_chunk):
        rows = min(row_chunk, L - r0)
        xp_ref[pad + r0:pad + r0 + rows, :] = x_ref[0, r0:r0 + rows, :]

    # --- Average pooling: chunked over output rows, unrolled over the window ---
    # (Direct k-way shifted-slice form; fine for the small kernel_size this
    #  module is used with.)
    inv_k = 1.0 / kernel_size
    for r0 in range(0, L_out, row_chunk):
        rows = min(row_chunk, L_out - r0)
        acc = jnp.zeros((rows, tc), jnp.float32)
        for j in range(kernel_size):
            start = r0 * stride + j
            if stride == 1:
                win = xp_ref[start:start + rows, :]
            else:
                # TODO(synk): stride > 1 uses a strided sublane gather; a contiguous
                # load + in-register decimation would be cheaper for downsampling configs.
                win = xp_ref[pl.ds(start, rows, stride=stride), :]
            acc = acc + win.astype(jnp.float32)
        o_ref[0, r0:r0 + rows, :] = (acc * inv_k).astype(o_ref.dtype)


@functools.partial(jax.jit, static_argnums=(1, 2))
def moving_avg(x: jax.Array, kernel_size: int, stride: int) -> jax.Array:
    """Equivalent of the PyTorch moving_avg.forward for x of shape (B, L, C)."""
    B, L, C = x.shape
    pad = (kernel_size - 1) // 2
    Lp = L + 2 * pad
    L_out = (Lp - kernel_size) // stride + 1
    itemsize = jnp.dtype(x.dtype).itemsize

    # Lane-density: for narrow channel counts fold batch onto the lane axis so
    # stores are (close to) 128-lane dense.  Pure layout plumbing in the wrapper.
    fold = C < 128
    if fold:
        xk = jnp.transpose(x, (1, 0, 2)).reshape(1, L, B * C)
        Beff, Ceff = 1, B * C
    else:
        xk = x
        Beff, Ceff = B, C

    tc = _choose_c_tile(Ceff, L, Lp, L_out, itemsize)
    n_c = Ceff // tc
    row_chunk = _choose_row_chunk(tc)

    kernel = functools.partial(
        _moving_avg_kernel,
        kernel_size=kernel_size, stride=stride, pad=pad,
        L=L, L_out=L_out, row_chunk=row_chunk,
    )

    est = _vmem_estimate_bytes(L, Lp, L_out, tc, itemsize)
    cp_kwargs = dict(dimension_semantics=("parallel", "parallel"))
    if est > (12 << 20):
        # Working set larger than the conservative default scoped-VMEM budget:
        # raise the limit explicitly (still well under the v7x 64 MiB physical).
        cp_kwargs["vmem_limit_bytes"] = int(min(est * 1.3 + (1 << 20), 64 << 20))

    out = pl.pallas_call(
        kernel,
        out_shape=jax.ShapeDtypeStruct((Beff, L_out, Ceff), x.dtype),
        grid_spec=pltpu.PrefetchScalarGridSpec(
            num_scalar_prefetch=0,
            grid=(Beff, n_c),
            in_specs=[pl.BlockSpec((1, L, tc), lambda b, c: (b, 0, c))],
            out_specs=pl.BlockSpec((1, L_out, tc), lambda b, c: (b, 0, c)),
            scratch_shapes=[pltpu.VMEM((Lp, tc), x.dtype)],
        ),
        compiler_params=pltpu.CompilerParams(**cp_kwargs),
    )(xk)

    if fold:
        out = out.reshape(L_out, B, C).transpose(1, 0, 2)
    return out


def _reference(x, kernel_size, stride):
    # Pure-JAX reference mirroring the PyTorch semantics.
    B, L, C = x.shape
    pad = (kernel_size - 1) // 2
    front = jnp.repeat(x[:, 0:1, :], pad, axis=1)
    end = jnp.repeat(x[:, L - 1:L, :], pad, axis=1)
    xp = jnp.concatenate([front, x, end], axis=1)
    Lp = xp.shape[1]
    L_out = (Lp - kernel_size) // stride + 1
    outs = []
    for t in range(L_out):
        outs.append(jnp.mean(xp[:, t * stride:t * stride + kernel_size, :], axis=1))
    return jnp.stack(outs, axis=1)


if __name__ == "__main__":
    kernel_size, stride = 5, 1   # moving_avg(kernel_size=5, stride=1)

    # Small-channel case (exercises the lane-dense fold path).
    B, L, C = 2, 16, 8
    x = jax.random.normal(jax.random.PRNGKey(0), (B, L, C), dtype=jnp.float32)
    out = jax.block_until_ready(moving_avg(x, kernel_size, stride))
    ref = _reference(x, kernel_size, stride)
    assert out.shape == ref.shape, (out.shape, ref.shape)
    assert jnp.allclose(out, ref, atol=1e-5, rtol=1e-5), "mismatch (small-C path)"

    # Wide-channel case (exercises the 128-lane-tiled path, no fold).
    B2, L2, C2 = 2, 32, 256
    x2 = jax.random.normal(jax.random.PRNGKey(0), (B2, L2, C2), dtype=jnp.float32)
    out2 = jax.block_until_ready(moving_avg(x2, kernel_size, stride))
    ref2 = _reference(x2, kernel_size, stride)
    assert out2.shape == ref2.shape, (out2.shape, ref2.shape)
    assert jnp.allclose(out2, ref2, atol=1e-5, rtol=1e-5), "mismatch (wide-C path)"

    print("KERNEL_OK")
</pallas_src>

<mosaic_0001>
module attributes {stable_mosaic.version = 11 : i64} {
  func.func @_moving_avg_kernel(%arg0: i32, %arg1: i32, %arg2: memref<1x16x16xf32, #tpu.memory_space<vmem>>, %arg3: memref<1x16x16xf32, #tpu.memory_space<vmem>>, %arg4: memref<20x16xf32, #tpu.memory_space<vmem>>) attributes {dimension_semantics = [#tpu.dimension_semantics<parallel>, #tpu.dimension_semantics<parallel>], iteration_bounds = array<i64: 1, 1>, scalar_prefetch = 0 : i64, scratch_operands = 1 : i64, tpu.core_type = #tpu.core_type<tc>, window_params = [{transform_indices = @transform_0, window_bounds = array<i64: 1, 16, 16>}, {transform_indices = @transform_1, window_bounds = array<i64: 1, 16, 16>}]} {
    %c0 = arith.constant 0 : index
    %c0_0 = arith.constant 0 : index
    %c0_1 = arith.constant 0 : index
    %0 = vector.load %arg2[%c0, %c0_0, %c0_1] : memref<1x16x16xf32, #tpu.memory_space<vmem>>, vector<1x1x16xf32>
    %1 = vector.shape_cast %0 : vector<1x1x16xf32> to vector<1x16xf32>
    %c0_2 = arith.constant 0 : index
    %c15 = arith.constant 15 : index
    %c0_3 = arith.constant 0 : index
    %2 = vector.load %arg2[%c0_2, %c15, %c0_3] : memref<1x16x16xf32, #tpu.memory_space<vmem>>, vector<1x1x16xf32>
    %3 = vector.shape_cast %2 : vector<1x1x16xf32> to vector<1x16xf32>
    %4 = vector.shape_cast %1 : vector<1x16xf32> to vector<1x16xf32>
    %5 = vector.broadcast %4 : vector<1x16xf32> to vector<2x16xf32>
    %c0_4 = arith.constant 0 : index
    %c0_5 = arith.constant 0 : index
    %6 = vector.load %arg4[%c0_4, %c0_5] : memref<20x16xf32, #tpu.memory_space<vmem>>, vector<2x16xf32>
    tpu.vector_store %arg4[%c0_4, %c0_5], %5 {strides = array<i32>} : memref<20x16xf32, #tpu.memory_space<vmem>>, vector<2x16xf32>,
    %7 = vector.shape_cast %3 : vector<1x16xf32> to vector<1x16xf32>
    %8 = vector.broadcast %7 : vector<1x16xf32> to vector<2x16xf32>
    %c18 = arith.constant 18 : index
    %c0_6 = arith.constant 0 : index
    %9 = vector.load %arg4[%c18, %c0_6] : memref<20x16xf32, #tpu.memory_space<vmem>>, vector<2x16xf32>
    tpu.vector_store %arg4[%c18, %c0_6], %8 {strides = array<i32>} : memref<20x16xf32, #tpu.memory_space<vmem>>, vector<2x16xf32>,
    %c0_7 = arith.constant 0 : index
    %c0_8 = arith.constant 0 : index
    %c0_9 = arith.constant 0 : index
    %10 = vector.load %arg2[%c0_7, %c0_8, %c0_9] : memref<1x16x16xf32, #tpu.memory_space<vmem>>, vector<1x16x16xf32>
    %11 = vector.shape_cast %10 : vector<1x16x16xf32> to vector<16x16xf32>
    %c2 = arith.constant 2 : index
    %c0_10 = arith.constant 0 : index
    %12 = vector.load %arg4[%c2, %c0_10] : memref<20x16xf32, #tpu.memory_space<vmem>>, vector<16x16xf32>
    tpu.vector_store %arg4[%c2, %c0_10], %11 {strides = array<i32>} : memref<20x16xf32, #tpu.memory_space<vmem>>, vector<16x16xf32>,
    %cst = arith.constant 0.000000e+00 : f32
    %13 = vector.broadcast %cst : f32 to vector<16x16xf32>
    %c0_11 = arith.constant 0 : index
    %c0_12 = arith.constant 0 : index
    %14 = vector.load %arg4[%c0_11, %c0_12] : memref<20x16xf32, #tpu.memory_space<vmem>>, vector<16x16xf32>
    %15 = arith.addf %13, %14 : vector<16x16xf32>
    %c1 = arith.constant 1 : index
    %c0_13 = arith.constant 0 : index
    %16 = vector.load %arg4[%c1, %c0_13] : memref<20x16xf32, #tpu.memory_space<vmem>>, vector<16x16xf32>
    %17 = arith.addf %15, %16 : vector<16x16xf32>
    %c2_14 = arith.constant 2 : index
    %c0_15 = arith.constant 0 : index
    %18 = vector.load %arg4[%c2_14, %c0_15] : memref<20x16xf32, #tpu.memory_space<vmem>>, vector<16x16xf32>
    %19 = arith.addf %17, %18 : vector<16x16xf32>
    %c3 = arith.constant 3 : index
    %c0_16 = arith.constant 0 : index
    %20 = vector.load %arg4[%c3, %c0_16] : memref<20x16xf32, #tpu.memory_space<vmem>>, vector<16x16xf32>
    %21 = arith.addf %19, %20 : vector<16x16xf32>
    %c4 = arith.constant 4 : index
    %c0_17 = arith.constant 0 : index
    %22 = vector.load %arg4[%c4, %c0_17] : memref<20x16xf32, #tpu.memory_space<vmem>>, vector<16x16xf32>
    %23 = arith.addf %21, %22 : vector<16x16xf32>
    %cst_18 = arith.constant 2.000000e-01 : f32
    %24 = vector.broadcast %cst_18 : f32 to vector<16x16xf32>
    %25 = arith.mulf %23, %24 : vector<16x16xf32>
    %c0_19 = arith.constant 0 : index
    %c0_20 = arith.constant 0 : index
    %c0_21 = arith.constant 0 : index
    %26 = vector.load %arg3[%c0_19, %c0_20, %c0_21] : memref<1x16x16xf32, #tpu.memory_space<vmem>>, vector<1x16x16xf32>
    %27 = vector.shape_cast %26 : vector<1x16x16xf32> to vector<16x16xf32>
    %28 = vector.shape_cast %25 : vector<16x16xf32> to vector<1x16x16xf32>
    tpu.vector_store %arg3[%c0_19, %c0_20, %c0_21], %28 {strides = array<i32>} : memref<1x16x16xf32, #tpu.memory_space<vmem>>, vector<1x16x16xf32>,
    return
  }
  func.func @transform_0(%arg0: i32, %arg1: i32) -> (i32, i32, i32) {
    %c0_i32 = arith.constant 0 : i32
    %c0_i32_0 = arith.constant 0 : i32
    return %arg0, %c0_i32, %arg1 : i32, i32, i32
  }
  func.func @transform_1(%arg0: i32, %arg1: i32) -> (i32, i32, i32) {
    %c0_i32 = arith.constant 0 : i32
    %c0_i32_0 = arith.constant 0 : i32
    return %arg0, %c0_i32, %arg1 : i32, i32, i32
  }
}

</mosaic_0001>

<bundles_post_ra>
// kernel: moving_avg.1
= control target key start
LH: loop header
LB: loop body
LE: loop exit
PB: predicated region body
PF: predicated region fallthrough
CT: control target
= control target key end

     0   :  { %vm17_vm0 = vcmask 130048   ;;  %vm11_vm1 = vcmask 123904   ;;  %s82_s0 = inlined_call_operand.vmem [shape: f32[1,16,16], index: 0, kind: input, shape index: {}]   ;;  %s83_s1 = inlined_call_operand.vmem [shape: f32[1,16,16], index: 1, kind: output, shape index: {}]  }
   0x1   :  { %v15_v0 = vld [vmem:[%s82_s0] sm:$0xff]  ;;  %v16_v1 = vld [vmem:[%s82_s0 + $0x8] sm:$0xff] }
   0x2   :  { %18 = vst.msk [vmem:[#allocation2 + $0x2] sm:$0xff] %vm17_vm0, %v15_v0  ;;  %v48_v2 = vld [vmem:[%s82_s0] ss:$0 sm:$0xff]  ;;  %v49_v3 = vld [vmem:[%s82_s0 + $0xf] ss:$0 sm:$0xff] }
   0x3   :  { %19 = vst.msk [vmem:[#allocation2 + $0xa] sm:$0xff] %vm17_vm0, %v16_v1 }
   0x4   :  { %12 = vst.msk [vmem:[#allocation2] sm:$0x3] %vm11_vm1, %v48_v2 }
   0x5   :  { %14 = vst.msk [vmem:[#allocation2 + $0x12] sm:$0x3] %vm11_vm1, %v49_v3 }
   0x9   :  { %v28_v12 = vld [vmem:[#allocation2 + $0x2] sm:$0xff] }
   0xa   :  { %v21_v4 = vld [vmem:[#allocation2 + $0x8] sm:$0xff] }
   0xb   :  { %v25_v5 = vld [vmem:[#allocation2 + $0x9] sm:$0xff]  ;;  %v20_v8 = vld [vmem:[#allocation2] sm:$0xff] }
   0xc   :  { %v29_v6 = vld [vmem:[#allocation2 + $0xa] sm:$0xff]  ;;  %v27_v7 = vadd.f32 %v25_v5, %v21_v4  ;;  %v24_v9 = vld [vmem:[#allocation2 + $0x1] sm:$0xff] }
   0xd   :  { %v26_v10 = vadd.f32 %v24_v9, %v20_v8  ;;  %v33_v13 = vld [vmem:[#allocation2 + $0xb] sm:$0xff]  ;;  %v32_v16 = vld [vmem:[#allocation2 + $0x3] sm:$0xff] }
   0xe   :  { %v31_v11 = vadd.f32 %v29_v6, %v27_v7  ;;  %v37_v17 = vld [vmem:[#allocation2 + $0xc] sm:$0xff]  ;;  %v36_v20 = vld [vmem:[#allocation2 + $0x4] sm:$0xff] }
   0xf   :  { %v30_v14 = vadd.f32 %v28_v12, %v26_v10 }
  0x10   :  { %v35_v15 = vadd.f32 %v33_v13, %v31_v11 }
  0x11   :  { %v34_v18 = vadd.f32 %v32_v16, %v30_v14 }
  0x12   :  { %v39_v19 = vadd.f32 %v37_v17, %v35_v15 }
  0x13   :  { %v38_v21 = vadd.f32 %v36_v20, %v34_v18 }
  0x14   :  { %v41_v22 = vmul.f32 0.2, %v39_v19 }
  0x15   :  { %v40_v23 = vmul.f32 0.2, %v38_v21 }
  0x16   :  { %43 = vst.msk [vmem:[%s83_s1 + $0x8] sm:$0xff] %vm17_vm0, %v41_v22 }
  0x17   :  { %42 = vst.msk [vmem:[%s83_s1] sm:$0xff] %vm17_vm0, %v40_v23 }

</bundles_post_ra>
